<compile_context>
chip_gen: v7x
topology: tpu7x:2x2x1
jax: 0.10.0
libtpu: 0.0.40
codegen_flags: <defaults>
</compile_context>

<pallas_src>
import functools

import jax
import jax.numpy as jnp
from jax.experimental import pallas as pl
from jax.experimental.pallas import tpu as pltpu


# ----------------------------------------------------------------------------
# Kernel
# ----------------------------------------------------------------------------
def _attention_head_kernel(feat_ref, w1_ref, b1_ref, w2_ref, out_ref, *,
                           s_actual, compute_dtype):
    # feat_ref : (TB, S_pad, H)  features (original dtype), S_pad % 8 == 0
    # w1_ref   : (H, H)          W_w_b_w.weight pre-transposed, compute_dtype
    # b1_ref   : (1, H) f32      W_w_b_w.bias
    # w2_ref   : (1, H) f32      u_w.weight as a row
    # out_ref  : (TB, H)
    TB, S, H = feat_ref.shape
    x = feat_ref[...]                                           # (TB, S, H)

    # ---- Linear 1 + tanh: one (TB*S, H) x (H, H) MXU matmul ----------------
    # S padded to a multiple of 8 by the wrapper -> this reshape stays within
    # (8,128) tiles (no relayout copy).  Operands in compute_dtype (bf16 at
    # realistic H), accumulation in f32.
    x_mm = x.reshape(TB * S, H).astype(compute_dtype)
    u = jnp.tanh(
        jnp.dot(x_mm, w1_ref[...], preferred_element_type=jnp.float32)
        + b1_ref[...]
    )                                                           # (TB*S, H) f32

    # ---- Linear 2 (out_features=1) as VPU multiply + lane reduce -----------
    # b2 is constant along S and cancels exactly in softmax(dim=1) -> dropped.
    logits = jnp.sum(u.reshape(TB, S, H) * w2_ref[...], axis=-1)  # (TB, S)

    # Mask padded sequence positions (trace-time constant mask).
    if s_actual < S:
        mask = (jnp.arange(S, dtype=jnp.int32) < s_actual).reshape(1, S)
        logits = jnp.where(mask, logits, jnp.float32(-1e30))

    # ---- Softmax over the sequence axis (PyTorch dim=1) --------------------
    logits = logits - jnp.max(logits, axis=-1, keepdims=True)
    e = jnp.exp(logits)
    denom = jnp.sum(e, axis=-1, keepdims=True)                  # (TB, 1)
    score = e * pl.reciprocal(denom, approx=True)               # (TB, S)  EUP

    # ---- Weighted sum over S: VPU multiply + sublane reduce ----------------
    # Padded rows have zero features, so they contribute exactly zero.
    pooled = jnp.sum(score[:, :, None] * x.astype(jnp.float32), axis=1)
    out_ref[...] = pooled.astype(out_ref.dtype)


# ----------------------------------------------------------------------------
# Wrapper helpers
# ----------------------------------------------------------------------------
def _auto_block_batch(B, S_pad, *, sublane=8, target_rows=512, max_rows=1024,
                      min_grid_steps=4):
    """Pick TB (divisor of B): multiple of `sublane` when possible (dense
    output stores), enough grid steps for megacore sharding + pipeline
    overlap, and TB*S_pad large enough to fill the MXU M dimension."""
    divisors = [d for d in range(1, B + 1)
                if B % d == 0 and d * S_pad <= max_rows] or [1]
    dense = [d for d in divisors if d % sublane == 0]
    pool = dense if dense else divisors
    for steps in (min_grid_steps, 2):
        stepped = [d for d in pool if B // d >= steps]
        if stepped:
            pool = stepped
            break
    for d in pool:
        if d * S_pad >= target_rows:
            return d
    return pool[-1]


def _vmem_limit_bytes(TB, S_pad, H, feat_isize, w1_isize, out_isize,
                      weight_bufs):
    feat_block = TB * S_pad * H * feat_isize * 2       # double-buffered stream
    w1_block = H * H * w1_isize * weight_bufs
    small = 2 * H * 4 * weight_bufs                     # b1 + w2 rows
    out_block = TB * H * out_isize * 2
    u_inter = TB * S_pad * H * 4                        # f32 intermediates
    est = feat_block + w1_block + small + out_block + 2 * u_inter
    est = int(est * 1.5) + (8 << 20)                    # headroom
    # Never below common scoped defaults, never above v7x's 64 MiB physical.
    return max(32 << 20, min(est, 64 << 20))


def _build_call(kernel, B, S_pad, H, TB, out_dtype, *, single_buffer_weights,
                vmem_limit_bytes, cost_estimate):
    def weight_spec(shape):
        idx = lambda b: (0,) * len(shape)
        if single_buffer_weights:
            # Constant index_map -> one buffer is enough; halves the VMEM
            # footprint of the (H, H) weight at realistic sizes.
            return pl.BlockSpec(shape, idx, pipeline_mode=pl.Buffered(1))
        return pl.BlockSpec(shape, idx)

    return pl.pallas_call(
        kernel,
        out_shape=jax.ShapeDtypeStruct((B, H), out_dtype),
        grid_spec=pltpu.PrefetchScalarGridSpec(
            num_scalar_prefetch=0,
            grid=(B // TB,),
            in_specs=[
                pl.BlockSpec((TB, S_pad, H), lambda b: (b, 0, 0)),  # features
                weight_spec((H, H)),                                # W1^T
                weight_spec((1, H)),                                # b1
                weight_spec((1, H)),                                # W2 row
            ],
            out_specs=pl.BlockSpec((TB, H), lambda b: (b, 0)),
        ),
        compiler_params=pltpu.CompilerParams(
            dimension_semantics=("parallel",),
            vmem_limit_bytes=vmem_limit_bytes,
        ),
        cost_estimate=cost_estimate,
    )


# ----------------------------------------------------------------------------
# Public wrapper
# ----------------------------------------------------------------------------
def attention_head(features, w1, b1, w2, b2=None, *, block_batch=None,
                   compute_dtype=None):
    """features: (B, S, H); w1: (H, H); b1: (H,); w2: (1, H); b2: (1,).
    b2 is unused: it is constant over S and cancels in the softmax.
    Returns (B, H)."""
    B, S, H = features.shape
    del b2  # softmax(att + c) == softmax(att): b2 has no effect on the output.

    # bf16 MXU operands at realistic widths; tiny demo widths stay f32.
    if compute_dtype is None:
        compute_dtype = (jnp.bfloat16
                         if (H >= 256 or features.dtype == jnp.bfloat16)
                         else jnp.float32)

    # Pad S to a multiple of 8 so in-kernel reshapes never relayout.
    S_pad = ((S + 7) // 8) * 8
    feats = features
    if S_pad != S:
        feats = jnp.pad(features, ((0, 0), (0, S_pad - S), (0, 0)))

    TB = block_batch if block_batch is not None else _auto_block_batch(B, S_pad)
    if B % TB != 0:
        raise ValueError(f"block_batch={TB} must divide batch size {B}")

    w1_t = jnp.asarray(w1).T.astype(compute_dtype)     # x @ w1_t == x @ W1.T
    b1_r = jnp.asarray(b1).reshape(1, H).astype(jnp.float32)
    w2_r = jnp.asarray(w2).reshape(1, H).astype(jnp.float32)

    kernel = functools.partial(_attention_head_kernel,
                               s_actual=S, compute_dtype=compute_dtype)

    feat_isize = jnp.dtype(feats.dtype).itemsize
    w1_isize = jnp.dtype(compute_dtype).itemsize
    out_isize = jnp.dtype(features.dtype).itemsize
    cost = pl.CostEstimate(
        flops=2 * B * S_pad * H * H + 4 * B * S_pad * H,
        transcendentals=B * S_pad * H + B * S_pad,
        bytes_accessed=(B * S_pad * H * feat_isize + H * H * w1_isize
                        + B * H * out_isize),
    )

    args = (feats, w1_t, b1_r, w2_r)
    try:
        vmem = _vmem_limit_bytes(TB, S_pad, H, feat_isize, w1_isize, out_isize,
                                 weight_bufs=1)
        return _build_call(kernel, B, S_pad, H, TB, features.dtype,
                           single_buffer_weights=True,
                           vmem_limit_bytes=vmem, cost_estimate=cost)(*args)
    except (TypeError, ValueError, NotImplementedError,
            pltpu.LoweringException):
        # Narrow fallback: only for JAX/Mosaic builds that reject
        # pipeline_mode=pl.Buffered(1) on a top-level BlockSpec.  Weights then
        # get default double buffering (harmless at demo sizes).
        # TODO(synk): at H=3072 on v7x prefer a one-time manual DMA of W1 into
        # a VMEM scratch (pl.ANY + pltpu.sync_copy under pl.when(step == 0)).
        vmem = _vmem_limit_bytes(TB, S_pad, H, feat_isize, w1_isize, out_isize,
                                 weight_bufs=2)
        return _build_call(kernel, B, S_pad, H, TB, features.dtype,
                           single_buffer_weights=False,
                           vmem_limit_bytes=vmem, cost_estimate=cost)(*args)


# ----------------------------------------------------------------------------
# Pure-JAX reference (mirrors the PyTorch module)
# ----------------------------------------------------------------------------
def reference(features, w1, b1, w2, b2):
    u = jnp.tanh(jnp.einsum("bsh,oh->bso", features, w1) + b1)   # (B, S, H)
    att = jnp.einsum("bsh,oh->bso", u, w2) + b2                  # (B, S, 1)
    att_score = jax.nn.softmax(att, axis=1)                      # over S
    return jnp.sum(att_score * features, axis=1)                 # (B, H)


if __name__ == "__main__":
    # Small but representative shapes: S=4 mirrors "last four BERT layers"
    # (exercises the S->8 padding + softmax-mask path); H=128 keeps every
    # block lane-dense.  TB resolves to 8 -> grid=(2,); each step runs a
    # (64, 128) x (128, 128) MXU matmul and writes a dense (8, 128) block.
    B, S, H = 16, 4, 128

    key = jax.random.PRNGKey(0)
    k_feat, k_w1, k_b1, k_w2, k_b2 = jax.random.split(key, 5)

    features = jax.random.normal(k_feat, (B, S, H), dtype=jnp.float32)

    # PyTorch nn.Linear conventions: weight=(out, in), bias=(out,)
    bound = 1.0 / (H ** 0.5)
    w1 = jax.random.uniform(k_w1, (H, H), jnp.float32, -bound, bound)  # W_w_b_w.weight
    b1 = jax.random.uniform(k_b1, (H,), jnp.float32, -bound, bound)    # W_w_b_w.bias
    w2 = jax.random.uniform(k_w2, (1, H), jnp.float32, -bound, bound)  # u_w.weight
    b2 = jax.random.uniform(k_b2, (1,), jnp.float32, -bound, bound)    # u_w.bias

    out = attention_head(features, w1, b1, w2, b2)
    out = jax.block_until_ready(out)

    ref = jax.block_until_ready(reference(features, w1, b1, w2, b2))
    assert out.shape == (B, H), out.shape
    max_err = float(jnp.max(jnp.abs(out - ref)))
    # Tolerance accommodates the EUP approx reciprocal in the softmax
    # denominator (denom in [1, S]); everything else is f32 at this width.
    assert jnp.allclose(out, ref, atol=3e-3, rtol=3e-3), (
        f"max abs err = {max_err}"
    )

    print("KERNEL_OK")
</pallas_src>

<mosaic_0001>
module attributes {stable_mosaic.version = 11 : i64} {
  func.func @_attention_head_kernel(%arg0: i32, %arg1: memref<8x8x128xf32, #tpu.memory_space<vmem>>, %arg2: memref<128x128xf32, #tpu.memory_space<vmem>>, %arg3: memref<1x128xf32, #tpu.memory_space<vmem>>, %arg4: memref<1x128xf32, #tpu.memory_space<vmem>>, %arg5: memref<8x128xf32, #tpu.memory_space<vmem>>) attributes {dimension_semantics = [#tpu.dimension_semantics<parallel>], iteration_bounds = array<i64: 2>, scalar_prefetch = 0 : i64, scratch_operands = 0 : i64, tpu.core_type = #tpu.core_type<tc>, window_params = [{transform_indices = @transform_0, window_bounds = array<i64: 8, 8, 128>}, {pipeline_mode = #tpu.pipeline_mode<synchronous>, transform_indices = @transform_1, window_bounds = array<i64: 128, 128>}, {pipeline_mode = #tpu.pipeline_mode<synchronous>, transform_indices = @transform_2, window_bounds = array<i64: 1, 128>}, {pipeline_mode = #tpu.pipeline_mode<synchronous>, transform_indices = @transform_3, window_bounds = array<i64: 1, 128>}, {transform_indices = @transform_4, window_bounds = array<i64: 8, 128>}]} {
    %c0 = arith.constant 0 : index
    %c0_0 = arith.constant 0 : index
    %c0_1 = arith.constant 0 : index
    %0 = vector.load %arg1[%c0, %c0_0, %c0_1] : memref<8x8x128xf32, #tpu.memory_space<vmem>>, vector<8x8x128xf32>
    %1 = vector.shape_cast %0 : vector<8x8x128xf32> to vector<64x128xf32>
    %c0_2 = arith.constant 0 : index
    %c0_3 = arith.constant 0 : index
    %2 = vector.load %arg2[%c0_2, %c0_3] : memref<128x128xf32, #tpu.memory_space<vmem>>, vector<128x128xf32>
    %cst = arith.constant dense<0.000000e+00> : vector<64x128xf32>
    %3 = tpu.matmul %1, %2, %cst {dimension_numbers = #tpu.dot_dimension_numbers<[1], [0], [0], [1], [0, 0, 1, 1], [], []>} : vector<64x128xf32>, vector<128x128xf32>, vector<64x128xf32> -> vector<64x128xf32>
    %c0_4 = arith.constant 0 : index
    %c0_5 = arith.constant 0 : index
    %4 = vector.load %arg3[%c0_4, %c0_5] : memref<1x128xf32, #tpu.memory_space<vmem>>, vector<1x128xf32>
    %5 = vector.broadcast %4 : vector<1x128xf32> to vector<64x128xf32>
    %6 = arith.addf %3, %5 : vector<64x128xf32>
    %7 = math.tanh %6 : vector<64x128xf32>
    %8 = vector.shape_cast %7 : vector<64x128xf32> to vector<8x8x128xf32>
    %c0_6 = arith.constant 0 : index
    %c0_7 = arith.constant 0 : index
    %9 = vector.load %arg4[%c0_6, %c0_7] : memref<1x128xf32, #tpu.memory_space<vmem>>, vector<1x128xf32>
    %10 = vector.shape_cast %9 : vector<1x128xf32> to vector<1x1x128xf32>
    %11 = vector.broadcast %10 : vector<1x1x128xf32> to vector<8x8x128xf32>
    %12 = arith.mulf %8, %11 : vector<8x8x128xf32>
    %cst_8 = arith.constant dense<0.000000e+00> : vector<8x8xf32>
    %13 = vector.multi_reduction <add>, %12, %cst_8 [2] : vector<8x8x128xf32> to vector<8x8xf32>
    %14 = tpu.iota {dimensions = array<i32: 1>} : vector<1x8xi32>
    %15 = vector.shape_cast %14 : vector<1x8xi32> to vector<8xi32>
    %c4_i32 = arith.constant 4 : i32
    %16 = vector.broadcast %c4_i32 : i32 to vector<8xi32>
    %17 = arith.cmpi slt, %15, %16 : vector<8xi32>
    %18 = vector.shape_cast %17 : vector<8xi1> to vector<1x8xi1>
    %cst_9 = arith.constant -1.000000e+30 : f32
    %19 = vector.shape_cast %18 : vector<1x8xi1> to vector<1x8xi1>
    %20 = vector.broadcast %19 : vector<1x8xi1> to vector<8x8xi1>
    %21 = vector.broadcast %cst_9 : f32 to vector<8x8xf32>
    %22 = arith.select %20, %13, %21 : vector<8x8xi1>, vector<8x8xf32>
    %cst_10 = arith.constant dense<0xFF800000> : vector<8xf32>
    %23 = vector.multi_reduction <maximumf>, %22, %cst_10 [1] : vector<8x8xf32> to vector<8xf32>
    %24 = vector.shape_cast %23 : vector<8xf32> to vector<8x1xf32>
    %25 = vector.broadcast %24 : vector<8x1xf32> to vector<8x8xf32>
    %26 = arith.subf %22, %25 : vector<8x8xf32>
    %27 = math.exp %26 : vector<8x8xf32>
    %cst_11 = arith.constant dense<0.000000e+00> : vector<8xf32>
    %28 = vector.multi_reduction <add>, %27, %cst_11 [1] : vector<8x8xf32> to vector<8xf32>
    %29 = vector.shape_cast %28 : vector<8xf32> to vector<8x1xf32>
    %30 = tpu.reciprocal %29 {approx = true} : vector<8x1xf32> -> vector<8x1xf32>
    %31 = vector.broadcast %30 : vector<8x1xf32> to vector<8x8xf32>
    %32 = arith.mulf %27, %31 : vector<8x8xf32>
    %33 = vector.shape_cast %32 : vector<8x8xf32> to vector<8x8x1xf32>
    %34 = vector.broadcast %33 : vector<8x8x1xf32> to vector<8x8x128xf32>
    %35 = arith.mulf %34, %0 : vector<8x8x128xf32>
    %cst_12 = arith.constant dense<0.000000e+00> : vector<8x128xf32>
    %36 = vector.multi_reduction <add>, %35, %cst_12 [1] : vector<8x8x128xf32> to vector<8x128xf32>
    %c0_13 = arith.constant 0 : index
    %c0_14 = arith.constant 0 : index
    %37 = vector.load %arg5[%c0_13, %c0_14] : memref<8x128xf32, #tpu.memory_space<vmem>>, vector<8x128xf32>
    tpu.vector_store %arg5[%c0_13, %c0_14], %36 {strides = array<i32>} : memref<8x128xf32, #tpu.memory_space<vmem>>, vector<8x128xf32>,
    return
  }
  func.func @transform_0(%arg0: i32) -> (i32, i32, i32) {
    %c0_i32 = arith.constant 0 : i32
    %c0_i32_0 = arith.constant 0 : i32
    %c0_i32_1 = arith.constant 0 : i32
    return %arg0, %c0_i32, %c0_i32_0 : i32, i32, i32
  }
  func.func @transform_1(%arg0: i32) -> (i32, i32) {
    %c0_i32 = arith.constant 0 : i32
    %c0_i32_0 = arith.constant 0 : i32
    %c0_i32_1 = arith.constant 0 : i32
    return %c0_i32, %c0_i32_0 : i32, i32
  }
  func.func @transform_2(%arg0: i32) -> (i32, i32) {
    %c0_i32 = arith.constant 0 : i32
    %c0_i32_0 = arith.constant 0 : i32
    %c0_i32_1 = arith.constant 0 : i32
    return %c0_i32, %c0_i32_0 : i32, i32
  }
  func.func @transform_3(%arg0: i32) -> (i32, i32) {
    %c0_i32 = arith.constant 0 : i32
    %c0_i32_0 = arith.constant 0 : i32
    %c0_i32_1 = arith.constant 0 : i32
    return %c0_i32, %c0_i32_0 : i32, i32
  }
  func.func @transform_4(%arg0: i32) -> (i32, i32) {
    %c0_i32 = arith.constant 0 : i32
    %c0_i32_0 = arith.constant 0 : i32
    return %arg0, %c0_i32 : i32, i32
  }
}

</mosaic_0001>

<bundles_post_ra>
// kernel: tpu_custom_call.1
= control target key start
LH: loop header
LB: loop body
LE: loop exit
PB: predicated region body
PF: predicated region fallthrough
CT: control target
= control target key end

     0   :  { %9 = vsyncpa [#allocation3], 0  ;;  %s1492_s0 = inlined_call_operand.hbm [shape: f32[16,8,128], index: 0, kind: input, shape index: {}]   ;;  %s1493_s1 = inlined_call_operand.hbm [shape: f32[128,128], index: 1, kind: input, shape index: {}]   ;;  %s1494_s2 = inlined_call_operand.vmem [shape: f32[1,128], index: 2, kind: input, shape index: {}]   ;;  %s1495_s3 = inlined_call_operand.vmem [shape: f32[1,128], index: 3, kind: input, shape index: {}]   ;;  %s1496_s4 = inlined_call_operand.hbm [shape: f32[16,128], index: 4, kind: output, shape index: {}]  }
   0x1   :  { %11 = vsyncpa [#allocation3 + $0x1], 0 }
   0x2   :  { %12 = vsyncpa [#allocation6], 0 }
   0x3   :  { %13 = vsyncpa [#allocation4], 0 }
   0x4   :  { %15 = vsyncpa [#allocation4 + $0x1], 0  ;;  %s1203_s15 = smov 0   ;;  %s1205_s16 = smov 0  }
   0x5   :  { %s1207_s17 = smov 0   ;;  %s1209_s18 = smov 0  }
   0x6 LB: > { %s1224_s19 = sadd.s32 4294967295, %s1171_s18   ;;  %s816_s20 = sadd.s32 4294967294, %s1171_s18   ;;  %s1171_s18 = sphi %s1209_s18, %s1516_s18   ;;  %s1167_s17 = sphi %s1207_s17, %s1515_s17   ;;  %s1163_s16 = sphi %s1205_s16, %s1514_s16   ;;  %s1159_s15 = sphi %s1203_s15, %s1513_s15  }
   0x7   : > { %p41_p0 = scmp.ne.s32.totalorder %s1163_s16, %s1159_s15  ;;  %p1497_p1 = scmp.eq.s32.totalorder %s1224_s19, 0 }
   0x8   : > { %p134_p3 = scmp.eq.s32.totalorder %s816_s20, 1  ;;  %p817_p5 = scmp.ge.s32.totalorder %s1171_s18, 1 }
   0x9   : > { %p1233_p4 = por %p1497_p1, %p41_p0  ;;  %p141_p7 = scmp.lt.s32.totalorder %s1171_s18, 3 }
   0xa   : > { %p1238_p6 = por %p134_p3, %p41_p0  ;;  %s1173_s24 = smov [#allocation5]  }
   0xb   : > { %s1500_s21 = scalar_select %p1233_p4, 1, 0 }
   0xc   : > { %s1501_s22 = scalar_select %p1238_p6, 1, 0 }
   0xd   : > { %p1243_p8 = pnand %p817_p5, %p141_p7  ;;  %s153_s25 = sshll.u32 %s1173_s24, 4  ;;  %s1247_s25 = int_to_ptr.vmem [resolvable:$true] %s153_s25 }
   0xe   : > { %s1259_s27 = sadd.s32 1, %s1171_s18   ;;  %s28_s28 = sadd.s32 1, %s1167_s17 }
   0xf   : > { %s1502_s23 = scalar_select %p1243_p8, 1, 0 }
  0x10   : > { %p958_p9 = pneg %p1243_p8  ;;  %s25_s29 = ssub.s32 %s1171_s18, %s1259_s27 }
  0x11   : > { %s1043_s6 = scalar_lea.hbm %s1493_s1, 2048 }
  0x12   : > { %p1254_p11 = pnand %p958_p9, %p1497_p1  ;;  %p1044_p12 = scmp.ne.s32.totalorder %s1493_s1, %s1043_s6 }
  0x13   : > { %p1050_p5 = scmp.lt.u32.totalorder %s1043_s6, %s1493_s1 }
  0x14   : > { %p1045_p13 = pneg %p1254_p11 }
  0x16   : > { %p1046_p0 = pnand %p1045_p13, %p1044_p12 }
  0x18   : > { %p1047_p3 = pneg %p1046_p0 }
  0x1a   : > { %p1052_p7 = pnand %p1050_p5, %p1047_p3 }
  0x1c   : > { %1055 = shalt.err (!%p1052_p7)
}
  0x1d   : > { %s1056_s11 = scalar_lea.vmem %s1247_s25, 2048  ;;  %p1064_p2 = scmp.lt.s32.totalorder %s1247_s25, %s1247_s25 }
  0x1e   : > { %p1057_p9 = scmp.ne.s32.totalorder %s1247_s25, %s1056_s11  ;;  %p1065_p6 = scmp.lt.s32.totalorder %s1056_s11, %s1056_s11 }
  0x20   : > { %p1059_p10 = pnand %p1057_p9, %p1045_p13  ;;  %p1066_p4 = por %p1065_p6, %p1064_p2 }
  0x22   : > { %p1060_p1 = pneg %p1059_p10 }
  0x24   : > { %p1067_p8 = pnand %p1066_p4, %p1060_p1 }
  0x26   : > { %1070 = shalt.err (!%p1067_p8)
}
  0x27   : > { %s1174_s12 = smov 128   ;;  %s1175_s13 = smov 8  }
  0x28   : > { %961 = dma.hbm_to_vmem [thread:$0]  (!%p1254_p11), %s1493_s1, 2048, %s1247_s25, [#allocation6], %s1174_s12, %s1174_s12, %s1175_s13  }
  0x29   : > { %p26_p1 = scmp.eq.s32.totalorder %s25_s29, 0  ;;  %p35_p2 = scmp.ne.s32.totalorder %s1167_s17, %s1163_s16 }
  0x2a   : > { %p36_p4 = scmp.eq.s32.totalorder %s1171_s18, 0  ;;  %p971_p6 = scmp.lt.s32.totalorder %s1171_s18, 2 }
  0x2b   : > { %s1293_s24 = scalar_select %p26_p1, %s1167_s17, %s28_s28  }
  0x2c   : > { %p37_p8 = por %p36_p4, %p35_p2  ;;  %p1504_p10 = scmp.eq.s32.totalorder %s1224_s19, 1 }
  0x2d   : > { %s173_s26 = sand.u32 1, %s1167_s17   ;;  %s833_s5 = sshll.u32 %s1171_s18, 10 }
  0x2e   : > { %p1297_p12 = por %p1504_p10, %p35_p2  ;;  %s820_s6 = sshll.u32 %s173_s26, 6 }
  0x2f   : > { %s1306_s9 = scalar_lea.hbm %s1492_s0, %s833_s5  ;;  %s177_s25 = scalar_lea.vmem [#allocation2], %s820_s6 }
  0x30   : > { %s184_s28 = sshll.u32 %s177_s25, 4  ;;  %p1308_p11 = pnand %p971_p6, %p37_p8  ;;  %s1312_s28 = int_to_ptr.vmem [resolvable:$true] %s184_s28 }
  0x31   : > { %s1314_s10 = scalar_lea.sflag [#allocation3], %s173_s26  ;;  %s1071_s11 = scalar_lea.hbm %s1306_s9, 1024 }
  0x32   : > { %p1072_p13 = scmp.ne.s32.totalorder %s1306_s9, %s1071_s11  ;;  %p1073_p0 = pneg %p1308_p11 }
  0x33   : > { %s1076_s5 = scalar_lea.hbm %s1492_s0, 2048  ;;  %p1077_p7 = scmp.lt.u32.totalorder %s1306_s9, %s1492_s0 }
  0x34   : > { %p1074_p3 = pnand %p1073_p0, %p1072_p13  ;;  %p1078_p9 = scmp.lt.u32.totalorder %s1076_s5, %s1071_s11 }
  0x35   : > { %p1080_p2 = scmp.lt.u32.totalorder %s1071_s11, %s1306_s9 }
  0x36   : > { %p1075_p5 = pneg %p1074_p3  ;;  %p1079_p1 = por %p1078_p9, %p1077_p7 }
  0x38   : > { %p1081_p4 = por %p1080_p2, %p1079_p1 }
  0x3a   : > { %p1082_p6 = pnand %p1081_p4, %p1075_p5 }
  0x3c   : > { %1085 = shalt.err (!%p1082_p6)
}
  0x3d   : > { %s1086_s26 = scalar_lea.vmem %s1312_s28, 1024  ;;  %s1176_s8 = smov [#allocation2]  }
  0x3e   : > { %p1087_p8 = scmp.ne.s32.totalorder %s1312_s28, %s1086_s26  ;;  %s1091_s25 = sshll.u32 %s1176_s8, 4  ;;  %s1092_s25 = int_to_ptr.vmem [resolvable:$false] %s1091_s25 }
  0x3f   : > { %s1093_s14 = scalar_lea.vmem %s1092_s25, 2048  ;;  %p1094_p3 = scmp.lt.s32.totalorder %s1312_s28, %s1092_s25 }
  0x40   : > { %p1089_p10 = pnand %p1087_p8, %p1073_p0  ;;  %p1095_p7 = scmp.lt.s32.totalorder %s1093_s14, %s1086_s26 }
  0x42   : > { %p1090_p13 = pneg %p1089_p10  ;;  %p1096_p9 = por %p1095_p7, %p1094_p3 }
  0x44   : > { %p1097_p1 = pnand %p1096_p9, %p1090_p13 }
  0x46   : > { %1100 = shalt.err (!%p1097_p1)
}
  0x47   : > { %965 = dma.hbm_to_vmem [thread:$0]  (!%p1308_p11), %s1306_s9, 1024, %s1312_s28, %s1314_s10, %s1174_s12, %s1174_s12, %s1175_s13  }
  0x48   : > { %p1507_p0 = scmp.ne.s32.totalorder %s1502_s23, 0 }
  0x49   : > { %s1348_s11 = sand.u32 (!%p1507_p0), 1, %s1163_s16   ;;  %p1508_p5 = scmp.ne.s32.totalorder (!%p1507_p0), %s1500_s21, 0 }
  0x4a   : > { %196 = sbr.rel (%p1507_p0) target bundleno = 997 (0x3e5), region = 36  ;;  %s824_s20 = sshll.u32 (!%p1507_p0), %s1348_s11, 6 }
  0x4b   : > { %s199_s5 = scalar_lea.sflag (!%p1507_p0), [#allocation3], %s1348_s11  ;;  %s1352_s6 = scalar_lea.vmem (!%p1507_p0), [#allocation2], %s824_s20 }
  0x51   : > { %1146 = dma.done.wait (%p1508_p5), %s199_s5, 1024  }
  0x52   : > { %1148 = vsyncadd (%p1508_p5), %s199_s5, 4294966272  ;;  %p1509_p11 = scmp.eq.s32.totalorder %s1224_s19, 0 }
  0x54   : > { %1150 = dma.done.wait (%p1509_p11), [#allocation6], 2048   ;;  %p1510_p2 = pmov %p1509_p11 }
  0x55   : > { %v240_v0 = vld [vmem:[#allocation5] sm:$0xff]  ;;  %v241_v1 = vld [vmem:[#allocation5 + $0x8] sm:$0xff]  ;;  %v242_v2 = vld [vmem:[#allocation5 + $0x10] sm:$0xff]  ;;  %vm477_vm1 = vcmask 1041409   ;;  %vm480_vm2 = vcmask 1042434   ;;  %vm483_vm3 = vcmask 1043459  }
  0x56   : > { %1152 = vsyncadd (%p1510_p2), [#allocation6], 4294965248  ;;  %v902_v3 = vpack.c.bf16 %v241_v1, %v240_v0  ;;  %v243_v4 = vld [vmem:[#allocation5 + $0x18] sm:$0xff]  ;;  %v244_v6 = vld [vmem:[#allocation5 + $0x20] sm:$0xff]  ;;  %vm486_vm4 = vcmask 1044484   ;;  %vm489_vm5 = vcmask 1045509  }
  0x57   : > { %v906_v5 = vpack.c.bf16 %v243_v4, %v242_v2  ;;  %v245_v7 = vld [vmem:[#allocation5 + $0x28] sm:$0xff]  ;;  %v1363_v9 = vld [vmem:[%s1352_s6] sm:$0xff]  ;;  %v246_v11 = vld [vmem:[#allocation5 + $0x30] sm:$0xff]  ;;  %v407_v2 = vlaneseq  ;;  %vm492_vm6 = vcmask 1046534   ;;  %vm495_vm7 = vcmask 1047559   ;;  %s826_s9 = sshll.u32 %s1348_s11, 3 }
  0x58   : > { %903 = vmatprep.subr.bf16.mxu0 %v902_v3  ;;  %934 = vmatprep.subr.bf16.mxu1 %v902_v3  ;;  %v910_v8 = vpack.c.bf16 %v245_v7, %v244_v6  ;;  %v1366_v10 = vld [vmem:[%s1352_s6 + $0x20] sm:$0xff]  ;;  %v247_v12 = vld [vmem:[#allocation5 + $0x38] sm:$0xff]  ;;  %v249_v15 = vld [vmem:[#allocation5 + $0x48] sm:$0xff]  ;;  %vm498_vm8 = vcmask 64512   ;;  %s830_s28 = sshll.u32 %s1224_s19, 7  ;;  %s230_s29 = scalar_lea.vmem [#allocation7], %s826_s9 }
  0x59   : > { %905 = vmatpush3.bf16.msra.mxu0 %v902_v3  ;;  %942 = vmatpush3.bf16.msra.mxu1 %v902_v3  ;;  %v914_v13 = vpack.c.bf16 %v247_v12, %v246_v11  ;;  %v248_v14 = vld [vmem:[#allocation5 + $0x40] sm:$0xff]  ;;  %v250_v17 = vld [vmem:[#allocation5 + $0x50] sm:$0xff]  ;;  %v251_v18 = vld [vmem:[#allocation5 + $0x58] sm:$0xff]  ;;  %v408_v3 = vand.u32 127, %v407_v2  ;;  %v1400_v4 = vshrl.u32 %v407_v2, 7  ;;  %s736_s10 = sshll.u32 %s230_s29, 4  ;;  %s1447_s8 = scalar_lea.hbm %s1496_s4, %s830_s28  ;;  %s1449_s10 = int_to_ptr.vmem [resolvable:$true] %s736_s10 }
  0x5a   : > { %907 = vmatprep.subr.bf16.mxu0 %v906_v5  ;;  %935 = vmatprep.subr.bf16.mxu1 %v906_v5  ;;  %v918_v16 = vpack.c.bf16 %v249_v15, %v248_v14  ;;  %v922_v19 = vpack.c.bf16 %v251_v18, %v250_v17  ;;  %v252_v20 = vld [vmem:[#allocation5 + $0x60] sm:$0xff]  ;;  %v253_v21 = vld [vmem:[#allocation5 + $0x68] sm:$0xff]  ;;  %v254_v23 = vld [vmem:[#allocation5 + $0x70] sm:$0xff]  ;;  %s723_s19 = scalar_lea.sflag [#allocation4], %s1348_s11  ;;  %s1101_s25 = scalar_lea.vmem %s1449_s10, 128 }
  0x5b   : > { %890 = vmatprep.mubr.f32.mxu0 %v1363_v9  ;;  %896 = vmatprep.mubr.f32.mxu1 %v1366_v10  ;;  %v926_v22 = vpack.c.bf16 %v253_v21, %v252_v20  ;;  %v255_v24 = vld [vmem:[#allocation5 + $0x78] sm:$0xff]  ;;  %v1371_v26 = vld [vmem:[%s1352_s6 + $0x8] sm:$0xff]  ;;  %v1377_v28 = vld [vmem:[%s1352_s6 + $0x10] sm:$0xff]  ;;  %vm409_vm0 = vcmp.lt.s32.totalorder %v408_v3, 4  ;;  %p1102_p4 = scmp.ne.s32.totalorder %s1449_s10, %s1101_s25  ;;  %s1177_s14 = smov [#allocation7]  }
  0x5c   : > { %v930_v25 = vpack.c.bf16 %v255_v24, %v254_v23  ;;  %v1374_v27 = vld [vmem:[%s1352_s6 + $0x28] sm:$0xff]  ;;  %v1380_v29 = vld [vmem:[%s1352_s6 + $0x30] sm:$0xff]  ;;  %v1386_v30 = vld [vmem:[%s1352_s6 + $0x18] sm:$0xff]  ;;  %s1105_s20 = sshll.u32 %s1177_s14, 4  ;;  %s1106_s20 = int_to_ptr.vmem [resolvable:$false] %s1105_s20 }
  0x5d   : > { %909 = vmatpush3.bf16.msra.mxu0 %v906_v5  ;;  %943 = vmatpush3.bf16.msra.mxu1 %v906_v5  ;;  %v1390_v31 = vld [vmem:[%s1352_s6 + $0x38] sm:$0xff]  ;;  %v827_v32 = vld [vmem:[%s1494_s2] ss:$0 sm:$0xff]  ;;  %v422_v5 = vsub.s32 %v408_v3, %v1400_v4  ;;  %p1103_p6 = pnand %p1102_p4, %p1297_p12  ;;  %s1107_s5 = scalar_lea.vmem %s1106_s20, 256 }
  0x5e   : > { %911 = vmatprep.subr.bf16.mxu0 %v910_v8  ;;  %936 = vmatprep.subr.bf16.mxu1 %v910_v8  ;;  %v828_v49 = vld [vmem:[%s1495_s3] ss:$0 sm:$0xff]  ;;  %p1108_p10 = scmp.lt.s32.totalorder %s1449_s10, %s1106_s20  ;;  %p1109_p13 = scmp.lt.s32.totalorder %s1107_s5, %s1101_s25 }
  0x5f   : > { %p1104_p8 = pneg %p1103_p6 }
  0x60   : > { %p1110_p3 = por %p1109_p13, %p1108_p10 }
  0x61   : > { %913 = vmatpush3.bf16.msra.mxu0 %v910_v8  ;;  %944 = vmatpush3.bf16.msra.mxu1 %v910_v8 }
  0x62   : > { %915 = vmatprep.subr.bf16.mxu0 %v914_v13  ;;  %937 = vmatprep.subr.bf16.mxu1 %v914_v13  ;;  %p1111_p7 = pnand %p1110_p3, %p1104_p8 }
  0x65   : > { %917 = vmatpush3.bf16.msra.mxu0 %v914_v13  ;;  %945 = vmatpush3.bf16.msra.mxu1 %v914_v13 }
  0x66   : > { %919 = vmatprep.subr.bf16.mxu0 %v918_v16  ;;  %938 = vmatprep.subr.bf16.mxu1 %v918_v16 }
  0x69   : > { %921 = vmatpush3.bf16.msra.mxu0 %v918_v16  ;;  %946 = vmatpush3.bf16.msra.mxu1 %v918_v16 }
  0x6a   : > { %923 = vmatprep.subr.bf16.mxu0 %v922_v19  ;;  %939 = vmatprep.subr.bf16.mxu1 %v922_v19 }
  0x6d   : > { %925 = vmatpush3.bf16.msra.mxu0 %v922_v19  ;;  %947 = vmatpush3.bf16.msra.mxu1 %v922_v19 }
  0x6e   : > { %927 = vmatprep.subr.bf16.mxu0 %v926_v22  ;;  %940 = vmatprep.subr.bf16.mxu1 %v926_v22 }
  0x71   : > { %929 = vmatpush3.bf16.msra.mxu0 %v926_v22  ;;  %948 = vmatpush3.bf16.msra.mxu1 %v926_v22 }
  0x72   : > { %931 = vmatprep.subr.bf16.mxu0 %v930_v25  ;;  %941 = vmatprep.subr.bf16.mxu1 %v930_v25 }
  0x75   : > { %933 = vmatpush3.bf16.msra.mxu0 %v930_v25  ;;  %949 = vmatpush3.bf16.msra.mxu1 %v930_v25 }
  0x78   : > { %891 = vmatmul.mubr.f32.vlgmr.msra.gmra.mrb[0].mxu0 %v1371_v26  ;;  %897 = vmatmul.mubr.f32.vlgmr.msra.gmra.mrb[0].mxu1 %v1374_v27 }
  0x79   : > { %893 = vmatprep.mubr.f32.mxu0 %v1377_v28  ;;  %899 = vmatprep.mubr.f32.mxu1 %v1380_v29 }
  0x7c   : > { %894 = vmatmul.mubr.f32.gmra.mrb[2].mxu0 %v1386_v30  ;;  %900 = vmatmul.mubr.f32.gmra.mrb[2].mxu1 %v1390_v31 }
 0x14b   : > { %v892_v33 = vpop.f32.mrb[0].mxu0  ;;  %v898_v34 = vpop.f32.mrb[0].mxu1 }
 0x14c   : > { %v335_v35 = vadd.f32 %v892_v33, %v827_v32  ;;  %v355_v36 = vadd.f32 %v898_v34, %v827_v32  ;;  %v329_v37 = vpop.f32.mrb[1].mxu0  ;;  %v349_v38 = vpop.f32.mrb[1].mxu1 }
 0x14d   : > { %v330_v39 = vadd.f32 %v827_v32, %v329_v37  ;;  %v350_v40 = vadd.f32 %v827_v32, %v349_v38 }
 0x14e   : > { %1009 = vtanh.f32 %v335_v35 }
 0x14f   : > { %1011 = vtanh.f32 %v355_v36  ;;  %v895_v41 = vpop.f32.mrb[2].mxu0  ;;  %v901_v42 = vpop.f32.mrb[2].mxu1 }
 0x150   : > { %1013 = vtanh.f32 %v330_v39  ;;  %v345_v43 = vadd.f32 %v895_v41, %v827_v32  ;;  %v339_v44 = vpop.f32.mrb[3].mxu0  ;;  %v359_v45 = vpop.f32.mrb[3].mxu1  ;;  %v365_v48 = vadd.f32 %v901_v42, %v827_v32 }
 0x151   : > { %1015 = vtanh.f32 %v350_v40  ;;  %v340_v46 = vadd.f32 %v827_v32, %v339_v44  ;;  %v360_v47 = vadd.f32 %v827_v32, %v359_v45 }
 0x152   : > { %1017 = vtanh.f32 %v345_v43 }
 0x153   : > { %1019 = vtanh.f32 %v340_v46 }
 0x154   : > { %1021 = vtanh.f32 %v360_v47 }
 0x155   : > { %1023 = vtanh.f32 %v365_v48 }
 0x158   : > { %v1010_v50 = vpop.eup %1009 }
 0x159   : > { %v1012_v51 = vpop.eup %1011  ;;  %v384_v52 = vmul.f32 %v1010_v50, %v828_v49 }
 0x15a   : > { %v1014_v53 = vpop.eup %1013  ;;  %v388_v54 = vmul.f32 %v1012_v51, %v828_v49 }
 0x15b   : > { %v1016_v55 = vpop.eup %1015  ;;  %393 = vadd.xlane.f32.xlu0 %v384_v52  ;;  %v383_v59 = vmul.f32 %v1014_v53, %v828_v49 }
 0x15c   : > { %v1018_v56 = vpop.eup %1017  ;;  %401 = vadd.xlane.f32.xlu1 %v388_v54  ;;  %v387_v58 = vmul.f32 %v1016_v55, %v828_v49 }
 0x15d   : > { %v1020_v57 = vpop.eup %1019  ;;  %v386_v62 = vmul.f32 %v1018_v56, %v828_v49 }
 0x15e   : > { %v385_v60 = vmul.f32 %v1020_v57, %v828_v49  ;;  %v1022_v61 = vpop.eup %1021 }
 0x15f   : > { %399 = vadd.xlane.f32.xlu0 %v387_v58  ;;  %v1024_v63 = vpop.eup %1023  ;;  %v389_v0 = vmul.f32 %v1022_v61, %v828_v49 }
 0x160   : > { %391 = vadd.xlane.f32.xlu1 %v383_v59  ;;  %v390_v1 = vmul.f32 %v1024_v63, %v828_v49 }
 0x163   : > { %395 = vadd.xlane.f32.xlu0 %v385_v60 }
 0x164   : > { %397 = vadd.xlane.f32.xlu1 %v386_v62 }
 0x167   : > { %403 = vadd.xlane.f32.xlu0 %v389_v0 }
 0x168   : > { %405 = vadd.xlane.f32.xlu1 %v390_v1 }
 0x1e8   : > { %v394_v6 = vpop.xlane.xlu0 %393 }
 0x1e9   : > { %v402_v7 = vpop.xlane.xlu1 %401  ;;  %v427_v8 = vrot.slane %v394_v6, %v422_v5 }
 0x1ea   : > { %v443_v15 = vrot.slane %v402_v7, %v422_v5 }
 0x1eb   : > { %v461_v16 = vsel %vm409_vm0, %v427_v8, -1e+30 }
 0x1ec   : > { %v400_v11 = vpop.xlane.xlu0 %399  ;;  %v476_v22 = vrot.slane %v461_v16, 7  ;;  %v465_v25 = vsel %vm409_vm0, %v443_v15, -1e+30 }
 0x1ed   : > { %v392_v12 = vpop.xlane.xlu1 %391  ;;  %v439_v14 = vrot.slane %v400_v11, %v422_v5  ;;  %v488_v42 = vrot.slane %v465_v25, 3 }
 0x1ee   : > { %v423_v13 = vrot.slane %v392_v12, %v422_v5 }
 0x1ef   : > { %v464_v23 = vsel %vm409_vm0, %v439_v14, -1e+30 }
 0x1f0   : > { %v396_v17 = vpop.xlane.xlu0 %395  ;;  %v460_v20 = vsel %vm409_vm0, %v423_v13, -1e+30  ;;  %v485_v39 = vrot.slane %v464_v23, 4 }
 0x1f1   : > { %v431_v18 = vrot.slane %v396_v17, %v422_v5  ;;  %v398_v19 = vpop.xlane.xlu1 %397  ;;  %v478_v35 = vsel %vm477_vm1, %v476_v22, %v460_v20 }
 0x1f2   : > { %v435_v21 = vrot.slane %v398_v19, %v422_v5 }
 0x1f3   : > { %v462_v24 = vsel %vm409_vm0, %v431_v18, -1e+30 }
 0x1f4   : > { %v479_v32 = vrot.slane %v462_v24, 6  ;;  %v463_v33 = vsel %vm409_vm0, %v435_v21, -1e+30  ;;  %v404_v34 = vpop.xlane.xlu0 %403 }
 0x1f5   : > { %v482_v36 = vrot.slane %v463_v33, 5  ;;  %v447_v37 = vrot.slane %v404_v34, %v422_v5  ;;  %v406_v38 = vpop.xlane.xlu1 %405 }
 0x1f6   : > { %v481_v40 = vsel %vm480_vm2, %v479_v32, %v478_v35  ;;  %v451_v41 = vrot.slane %v406_v38, %v422_v5 }
 0x1f7   : > { %v484_v43 = vsel %vm483_vm3, %v482_v36, %v481_v40  ;;  %v466_v44 = vsel %vm409_vm0, %v447_v37, -1e+30 }
 0x1f8   : > { %v491_v45 = vrot.slane %v466_v44, 2  ;;  %v467_v46 = vsel %vm409_vm0, %v451_v41, -1e+30  ;;  %v487_v47 = vsel %vm486_vm4, %v485_v39, %v484_v43 }
 0x1f9   : > { %v494_v48 = vrot.slane %v467_v46, 1  ;;  %v490_v49 = vsel %vm489_vm5, %v488_v42, %v487_v47 }
 0x1fa   : > { %v493_v50 = vsel %vm492_vm6, %v491_v45, %v490_v49 }
 0x1fb   : > { %v496_v51 = vsel %vm495_vm7, %v494_v48, %v493_v50 }
 0x1fc   : > { %v499_v52 = vsel %vm498_vm8, %v496_v51, -inf }
 0x1fd   : > { %500 = vmax.xlane.f32.xlu0 %v499_v52 }
 0x28a   : > { %v501_v53 = vpop.xlane.xlu0 %500 }
 0x28b   : > { %v503_v54 = vrot.slane %v501_v53, 1  ;;  %v504_v55 = vrot.slane %v501_v53, 2  ;;  %v505_v56 = vrot.slane %v501_v53, 3  ;;  %v506_v57 = vrot.slane %v501_v53, 4 }
 0x28c   : > { %v507_v58 = vrot.slane %v501_v53, 5  ;;  %v508_v59 = vrot.slane %v501_v53, 6  ;;  %v509_v60 = vrot.slane %v501_v53, 7  ;;  %v518_v61 = vsub.f32 %v460_v20, %v501_v53 }
 0x28d   : > { %v519_v62 = vsub.f32 %v461_v16, %v503_v54  ;;  %v520_v63 = vsub.f32 %v462_v24, %v504_v55  ;;  %v521_v0 = vsub.f32 %v463_v33, %v505_v56  ;;  %v522_v1 = vsub.f32 %v464_v23, %v506_v57 }
 0x28e   : > { %v523_v2 = vsub.f32 %v465_v25, %v507_v58  ;;  %v526_v3 = vmul.f32 1.442695, %v518_v61  ;;  %v524_v5 = vsub.f32 %v466_v44, %v508_v59  ;;  %v525_v11 = vsub.f32 %v467_v46, %v509_v60 }
 0x28f   : > { %v528_v6 = vmul.f32 1.442695, %v519_v62  ;;  %v530_v7 = vmul.f32 1.442695, %v520_v63  ;;  %v532_v8 = vmul.f32 1.442695, %v521_v0 }
 0x290   : > { %1025 = vpow2.f32 %v526_v3  ;;  %v534_v12 = vmul.f32 1.442695, %v522_v1  ;;  %v536_v13 = vmul.f32 1.442695, %v523_v2  ;;  %v538_v14 = vmul.f32 1.442695, %v524_v5 }
 0x291   : > { %1027 = vpow2.f32 %v528_v6  ;;  %v540_v15 = vmul.f32 1.442695, %v525_v11  ;;  %v595_v46 = vsub.s32 0, %v1400_v4 }
 0x292   : > { %1029 = vpow2.f32 %v530_v7 }
 0x293   : > { %1031 = vpow2.f32 %v532_v8 }
 0x294   : > { %1033 = vpow2.f32 %v534_v12 }
 0x295   : > { %1035 = vpow2.f32 %v536_v13 }
 0x296   : > { %1037 = vpow2.f32 %v538_v14 }
 0x297   : > { %1039 = vpow2.f32 %v540_v15 }
 0x29a   : > { %v1026_v16 = vpop.eup %1025 }
 0x29b   : > { %v1028_v17 = vpop.eup %1027 }
 0x29c   : > { %v1030_v18 = vpop.eup %1029  ;;  %v550_v19 = vrot.slane %v1028_v17, 7 }
 0x29d   : > { %v1032_v20 = vpop.eup %1031  ;;  %v552_v21 = vrot.slane %v1030_v18, 6 }
 0x29e   : > { %v1034_v22 = vpop.eup %1033  ;;  %v551_v23 = vsel %vm477_vm1, %v550_v19, %v1026_v16  ;;  %v554_v24 = vrot.slane %v1032_v20, 5 }
 0x29f   : > { %v1036_v25 = vpop.eup %1035  ;;  %v553_v32 = vsel %vm480_vm2, %v552_v21, %v551_v23  ;;  %v556_v33 = vrot.slane %v1034_v22, 4 }
 0x2a0   : > { %v1038_v34 = vpop.eup %1037  ;;  %v555_v35 = vsel %vm483_vm3, %v554_v24, %v553_v32  ;;  %v558_v36 = vrot.slane %v1036_v25, 3 }
 0x2a1   : > { %v1040_v37 = vpop.eup %1039  ;;  %v557_v38 = vsel %vm486_vm4, %v556_v33, %v555_v35  ;;  %v560_v39 = vrot.slane %v1038_v34, 2 }
 0x2a2   : > { %v559_v40 = vsel %vm489_vm5, %v558_v36, %v557_v38  ;;  %v562_v41 = vrot.slane %v1040_v37, 1 }
 0x2a3   : > { %v561_v42 = vsel %vm492_vm6, %v560_v39, %v559_v40 }
 0x2a4   : > { %v563_v43 = vsel %vm495_vm7, %v562_v41, %v561_v42 }
 0x2a5   : > { %v565_v44 = vsel %vm498_vm8, %v563_v43, 0.0 }
 0x2a6   : > { %566 = vadd.xlane.f32.xlu1 %v565_v44 }
 0x333   : > { %v567_v45 = vpop.xlane.xlu1 %566 }
 0x334   : > { %1041 = vrcp.f32 %v567_v45 }
 0x33e   : > { %v1042_v47 = vpop.eup %1041 }
 0x33f   : > { %v585_v48 = vmul.f32 %v1042_v47, %v1026_v16  ;;  %v570_v49 = vrot.slane %v1042_v47, 1  ;;  %v573_v50 = vrot.slane %v1042_v47, 4  ;;  %v571_v51 = vrot.slane %v1042_v47, 2 }
 0x340   : > { %v575_v55 = vrot.slane %v1042_v47, 6  ;;  %v572_v58 = vrot.slane %v1042_v47, 3  ;;  %v574_v4 = vrot.slane %v1042_v47, 5  ;;  %v576_v2 = vrot.slane %v1042_v47, 7 }
 0x341   : > { %v596_v52 = vrot.slane %v585_v48, %v595_v46  ;;  %v586_v53 = vmul.f32 %v1028_v17, %v570_v49  ;;  %v589_v54 = vmul.f32 %v1034_v22, %v573_v50  ;;  %v587_v57 = vmul.f32 %v1030_v18, %v571_v51 }
 0x342   : > { %v591_v60 = vmul.f32 %v1038_v34, %v575_v55  ;;  %v588_v62 = vmul.f32 %v1032_v20, %v572_v58  ;;  %v590_v1 = vmul.f32 %v1036_v25, %v574_v4  ;;  %v592_v5 = vmul.f32 %v1040_v37, %v576_v2 }
 0x343   : > { %598 = vbcast.lane.b32.xlu0 %v596_v52, 256  ;;  %v603_v56 = vrot.slane %v586_v53, %v595_v46  ;;  %v624_v59 = vrot.slane %v589_v54, %v595_v46  ;;  %v610_v61 = vrot.slane %v587_v57, %v595_v46 }
 0x344   : > { %v638_v63 = vrot.slane %v591_v60, %v595_v46  ;;  %v617_v0 = vrot.slane %v588_v62, %v595_v46  ;;  %v631_v3 = vrot.slane %v590_v1, %v595_v46  ;;  %v645_v6 = vrot.slane %v592_v5, %v595_v46 }
 0x345   : > { %605 = vbcast.lane.b32.xlu1 %v603_v56, 256 }
 0x347   : > { %626 = vbcast.lane.b32.xlu0 %v624_v59, 256 }
 0x349   : > { %612 = vbcast.lane.b32.xlu1 %v610_v61, 256 }
 0x34b   : > { %640 = vbcast.lane.b32.xlu0 %v638_v63, 256 }
 0x34d   : > { %619 = vbcast.lane.b32.xlu1 %v617_v0, 256 }
 0x351   : > { %633 = vbcast.lane.b32.xlu1 %v631_v3, 256 }
 0x355   : > { %647 = vbcast.lane.b32.xlu1 %v645_v6, 256 }
 0x3b5   : > { %v599_v7 = vpop.permute.xlu0 %598 }
 0x3b6   : > { %v649_v8 = vmul.f32 %v599_v7, %v1363_v9 }
 0x3b7   : > { %v606_v11 = vpop.permute.xlu1 %605 }
 0x3b8   : > { %v657_v12 = vrot.slane %v649_v8, 4  ;;  %v650_v13 = vmul.f32 %v606_v11, %v1371_v26 }
 0x3b9   : > { %v627_v14 = vpop.permute.xlu0 %626 }
 0x3ba   : > { %v663_v15 = vrot.slane %v650_v13, 4  ;;  %v653_v16 = vmul.f32 %v627_v14, %v1366_v10  ;;  %v658_v17 = vadd.f32 %v657_v12, %v649_v8 }
 0x3bb   : > { %v613_v18 = vpop.permute.xlu1 %612 }
 0x3bc   : > { %v664_v19 = vadd.f32 %v663_v15, %v650_v13  ;;  %v681_v20 = vrot.slane %v653_v16, 4  ;;  %v651_v21 = vmul.f32 %v613_v18, %v1377_v28  ;;  %v659_v25 = vrot.slane %v658_v17, 2 }
 0x3bd   : > { %v641_v22 = vpop.permute.xlu0 %640 }
 0x3be   : > { %v665_v23 = vrot.slane %v664_v19, 2  ;;  %v669_v24 = vrot.slane %v651_v21, 4  ;;  %v682_v32 = vadd.f32 %v681_v20, %v653_v16  ;;  %v655_v9 = vmul.f32 %v641_v22, %v1380_v29 }
 0x3bf   : > { %v620_v33 = vpop.permute.xlu1 %619  ;;  %v660_v37 = vadd.f32 %v659_v25, %v658_v17 }
 0x3c0   : > { %v670_v34 = vadd.f32 %v669_v24, %v651_v21  ;;  %v666_v26 = vadd.f32 %v665_v23, %v664_v19  ;;  %v693_v35 = vrot.slane %v655_v9, 4  ;;  %v652_v36 = vmul.f32 %v620_v33, %v1386_v30 }
 0x3c1   : > { %v683_v38 = vrot.slane %v682_v32, 2  ;;  %v661_v29 = vrot.slane %v660_v37, 1 }
 0x3c2   : > { %v671_v10 = vrot.slane %v670_v34, 2  ;;  %v694_v39 = vadd.f32 %v693_v35, %v655_v9  ;;  %v675_v40 = vrot.slane %v652_v36, 4  ;;  %v667_v43 = vrot.slane %v666_v26, 1 }
 0x3c3   : > { %v634_v41 = vpop.permute.xlu1 %633  ;;  %v684_v47 = vadd.f32 %v683_v38, %v682_v32  ;;  %v662_v57 = vadd.f32 %v661_v29, %v660_v37 }
 0x3c4   : > { %v672_v28 = vadd.f32 %v671_v10, %v670_v34  ;;  %v654_v42 = vmul.f32 %v634_v41, %v1374_v27  ;;  %v676_v44 = vadd.f32 %v675_v40, %v652_v36  ;;  %v695_v48 = vrot.slane %v694_v39, 2 }
 0x3c5   : > { %v668_v52 = vadd.f32 %v667_v43, %v666_v26  ;;  %v685_v27 = vrot.slane %v684_v47, 1 }
 0x3c6   : > { %v673_v45 = vrot.slane %v672_v28, 1  ;;  %v687_v46 = vrot.slane %v654_v42, 4  ;;  %v677_v49 = vrot.slane %v676_v44, 2  ;;  %v696_v58 = vadd.f32 %v695_v48, %v694_v39 }
 0x3c7   : > { %v648_v50 = vpop.permute.xlu1 %647  ;;  %v713_v62 = vsel %vm477_vm1, %v668_v52, %v662_v57  ;;  %v686_v1 = vadd.f32 %v685_v27, %v684_v47 }
 0x3c8   : > { %v688_v30 = vadd.f32 %v687_v46, %v654_v42  ;;  %v656_v51 = vmul.f32 %v648_v50, %v1390_v31  ;;  %v678_v53 = vadd.f32 %v677_v49, %v676_v44  ;;  %v674_v54 = vadd.f32 %v673_v45, %v672_v28 }
 0x3c9   : > { %v697_v2 = vrot.slane %v696_v58, 1 }
 0x3ca   : > { %v689_v55 = vrot.slane %v688_v30, 2  ;;  %v699_v56 = vrot.slane %v656_v51, 4  ;;  %v679_v59 = vrot.slane %v678_v53, 1  ;;  %v714_v63 = vsel %vm480_vm2, %v674_v54, %v713_v62 }
 0x3cb   : > { %v698_v12 = vadd.f32 %v697_v2, %v696_v58 }
 0x3cc   : > { %v690_v60 = vadd.f32 %v689_v55, %v688_v30  ;;  %v700_v61 = vadd.f32 %v699_v56, %v656_v51  ;;  %v680_v4 = vadd.f32 %v679_v59, %v678_v53 }
 0x3ce   : > { %v691_v0 = vrot.slane %v690_v60, 1  ;;  %v701_v31 = vrot.slane %v700_v61, 2  ;;  %v715_v3 = vsel %vm483_vm3, %v680_v4, %v714_v63 }
 0x3cf   : > { %v716_v7 = vsel %vm486_vm4, %v686_v1, %v715_v3 }
 0x3d0   : > { %v692_v5 = vadd.f32 %v691_v0, %v690_v60  ;;  %v702_v6 = vadd.f32 %v701_v31, %v700_v61 }
 0x3d2   : > { %v717_v8 = vsel %vm489_vm5, %v692_v5, %v716_v7  ;;  %v703_v11 = vrot.slane %v702_v6, 1 }
 0x3d3   : > { %v718_v14 = vsel %vm492_vm6, %v698_v12, %v717_v8 }
 0x3d4   : > { %v704_v13 = vadd.f32 %v703_v11, %v702_v6 }
 0x3d6   : > { %v719_v15 = vsel %vm495_vm7, %v704_v13, %v718_v14 }
 0x3d7   : > { %721 = vst [vmem:[%s230_s29] sm:$0xff] %v719_v15 }
 0x3d8   : > { %1114 = shalt.err (!%p1111_p7)
}
 0x3d9   : > { %s1115_s11 = scalar_lea.hbm %s1447_s8, 128  ;;  %s1119_s23 = scalar_lea.hbm %s1496_s4, 256 }
 0x3da   : > { %p1116_p9 = scmp.ne.s32.totalorder %s1447_s8, %s1115_s11  ;;  %p1120_p5 = scmp.lt.u32.totalorder %s1447_s8, %s1496_s4 }
 0x3db   : > { %p1121_p11 = scmp.lt.u32.totalorder %s1119_s23, %s1115_s11  ;;  %p1123_p4 = scmp.lt.u32.totalorder %s1115_s11, %s1447_s8 }
 0x3dc   : > { %p1117_p1 = pnand %p1116_p9, %p1297_p12 }
 0x3dd   : > { %p1122_p2 = por %p1121_p11, %p1120_p5 }
 0x3de   : > { %p1118_p0 = pneg %p1117_p1 }
 0x3df   : > { %p1124_p6 = por %p1123_p4, %p1122_p2 }
 0x3e1   : > { %p1125_p8 = pnand %p1124_p6, %p1118_p0 }
 0x3e3   : > { %1128 = shalt.err (!%p1125_p8)
}
 0x3e4   : > { %956 = dma.vmem_to_hbm [thread:$0]  (%p1297_p12), %s1449_s10, 128, %s1447_s8, %s723_s19  }
 0x3e5 PF: > { %s748_s9 = sand.u32 1, %s1159_s15   ;;  %p1511_p10 = scmp.ne.s32.totalorder %s1501_s22, 0 }
 0x3e6   : > { %p1512_p13 = scmp.ge.s32.totalorder %s1171_s18, 2  ;;  %s749_s28 = scalar_lea.sflag [#allocation4], %s748_s9 }
 0x3e8   : > { %p967_p3 = pnand %p1512_p13, %p1511_p10 }
 0x3ea   : > { %1154 = dma.done.wait (!%p967_p3), %s749_s28, 128  }
 0x3eb   : > { %1156 = vsyncadd (!%p967_p3), %s749_s28, 4294967168  ;;  %p18_p7 = scmp.ge.s32.totalorder %s1259_s27, 4   ;;  %s1513_s15 = smov %s1163_s16 }
 0x3ec   : > { %s1514_s16 = smov %s1167_s17  ;;  %s1515_s17 = smov %s1293_s24 }
 0x3ed   : > { %s1516_s18 = smov %s1259_s27  ;;  %20 = sbr.rel (!%p18_p7) target bundleno = 6 (0x6), region = 85 }
 0x3f4   :  { %754 = vsyncpa [#allocation3], 1 }
 0x3f5   :  { %756 = vsyncpa [#allocation3 + $0x1], 1 }
 0x3f6   :  { %757 = vsyncpa [#allocation6], 1 }
 0x3f7   :  { %758 = vsyncpa [#allocation4], 1 }
 0x3f8   :  { %760 = vsyncpa [#allocation4 + $0x1], 1 }

</bundles_post_ra>
